<compile_context>
chip_gen: v7x
topology: tpu7x:2x2x1
jax: 0.10.0
libtpu: 0.0.40
codegen_flags: <defaults>
</compile_context>

<pallas_src>
import functools

import jax
import jax.numpy as jnp
from jax.experimental import pallas as pl
from jax.experimental.pallas import tpu as pltpu


def _hw_config():
    """Best-effort hardware introspection (VMEM size, bf16 VPU, megacore)."""
    vmem_bytes = 64 << 20          # conservative default = v7x physical VMEM
    bf16_vpu = True                # v6e / v7x VPUs are bf16-capable
    multi_core = False             # v7x has 2 TensorCores per chip
    try:
        vmem_bytes = int(pltpu.get_tpu_info().vmem_capacity_bytes)
    except Exception:
        pass
    try:
        kind = jax.devices()[0].device_kind.lower()
    except Exception:
        kind = ""
    if "v5 lite" in kind or "v5e" in kind or "v5lite" in kind:
        bf16_vpu = False           # v5e has no bf16 VALU: do the FMA in f32
    if "v7" in kind:
        multi_core = True
    return vmem_bytes, bf16_vpu, multi_core


# ---------------------------------------------------------------------------
# Fused path: one grid step per virtual-batch group, everything VMEM-resident.
# ---------------------------------------------------------------------------
def _bn_fused_kernel(x_ref, w_ref, b_ref, o_ref, *, eps, affine, inv_n,
                     t_sub, n_sub, t_rem, f32_fma):
    M = x_ref.shape[1]
    C = x_ref.shape[2]

    # Static, lane-aligned T sub-tiles + a static ragged tail slice.
    slices = [slice(j * t_sub, (j + 1) * t_sub) for j in range(n_sub)]
    if t_rem > 0:
        slices.append(slice(n_sub * t_sub, None))

    # Per-channel pivot (first time-step of the first row): makes the one-pass
    # E[d^2]-E[d]^2 variance robust to large DC offsets for ~1 vsub/elem.
    pivot = x_ref[0, 0, :, 0:1].astype(jnp.float32)          # (C, 1)

    # ---- Pass 1 (reads VMEM block): per-channel sum / sum-of-squares.
    # Only a (C, <=t_sub) f32 temporary is live at a time. ----
    def stats_row(m, carry):
        a1, a2 = carry
        for sl in slices:
            xf = x_ref[0, m, :, sl].astype(jnp.float32) - pivot
            a1 = a1 + jnp.sum(xf, axis=1, keepdims=True)
            a2 = a2 + jnp.sum(xf * xf, axis=1, keepdims=True)
        return a1, a2

    zero = jnp.zeros((C, 1), jnp.float32)
    s1, s2 = jax.lax.fori_loop(0, M, stats_row, (zero, zero), unroll=(M <= 4))

    dmean = s1 * inv_n                                       # E[x - pivot]
    mean = pivot + dmean
    var = jnp.maximum(s2 * inv_n - dmean * dmean, 0.0)
    rstd = jax.lax.rsqrt(var + eps)

    # Fold normalization + affine into per-channel scale/shift so the big
    # tensor only sees one multiply and one add.
    if affine:
        scale = rstd * w_ref[...]                            # (C, 1) f32
        shift = b_ref[...] - mean * scale
    else:
        scale = rstd
        shift = -(mean * scale)

    use_bf16_fma = (not f32_fma) and x_ref.dtype == jnp.bfloat16
    if use_bf16_fma:
        # bf16 FMA path (v6e/v7x bf16 VALUs): halves VALU work and temps.
        scale_lp = scale.astype(jnp.bfloat16)
        shift_lp = shift.astype(jnp.bfloat16)

    def apply_tile(xt):
        if use_bf16_fma:
            return xt * scale_lp + shift_lp
        return (xt.astype(jnp.float32) * scale + shift).astype(o_ref.dtype)

    # ---- Pass 2 (VMEM-resident): x*scale + shift over the same sub-tiles. ----
    def apply_row(m, carry):
        for sl in slices:
            o_ref[0, m, :, sl] = apply_tile(x_ref[0, m, :, sl])
        return carry

    jax.lax.fori_loop(0, M, apply_row, 0, unroll=(M <= 4))


# ---------------------------------------------------------------------------
# Chunked two-pass path: stats accumulation + apply, grid = (G, Cc, Tc).
# ---------------------------------------------------------------------------
def _bn_stats_kernel(x_ref, s1_ref, s2_ref, *, t_total, t_chunk):
    t_idx = pl.program_id(2)

    @pl.when(t_idx == 0)
    def _():
        s1_ref[...] = jnp.zeros_like(s1_ref)
        s2_ref[...] = jnp.zeros_like(s2_ref)

    def accum(xf):
        s1_ref[...] += jnp.sum(xf, axis=(0, 2), keepdims=True)
        s2_ref[...] += jnp.sum(xf * xf, axis=(0, 2), keepdims=True)

    # TODO(synk): if inputs can carry huge DC offsets, add a per-channel pivot
    # (or Welford merge) here too; the fused path already uses a pivot.
    if t_total % t_chunk == 0:
        accum(x_ref[0].astype(jnp.float32))
    else:
        last = pl.num_programs(2) - 1

        @pl.when(t_idx != last)
        def _():
            accum(x_ref[0].astype(jnp.float32))

        @pl.when(t_idx == last)
        def _():
            # Mask only the ragged tail chunk so block padding never reaches
            # the sums (full-size chunks pay no iota/compare/select cost).
            xf = x_ref[0].astype(jnp.float32)
            col = jax.lax.broadcasted_iota(jnp.int32, xf.shape, 2)
            accum(jnp.where(col < t_total - t_idx * t_chunk, xf, 0.0))


def _bn_apply_kernel(x_ref, scale_ref, shift_ref, o_ref, *, f32_fma):
    x = x_ref[0]                       # (M, tC, tT)
    scale = scale_ref[0]               # (tC, 1) f32
    shift = shift_ref[0]
    if (not f32_fma) and x.dtype == jnp.bfloat16:
        o_ref[0] = x * scale.astype(x.dtype) + shift.astype(x.dtype)
    else:
        o_ref[0] = (x.astype(jnp.float32) * scale + shift).astype(o_ref.dtype)


def _pick_chunks(M, C, T, itemsize, budget):
    """Pick (c_chunk, t_chunk) for the chunked path within the VMEM budget."""
    per_elem = 4 * itemsize + 8        # dbl-buffered in + out blocks + f32 temps
    t = int(budget // max(M * C * per_elem, 1))
    if t >= T:
        return C, T
    if t >= 128:
        return C, (t // 128) * 128     # lane-dense, satisfies (.., 128) tiling
    # T chunk pinned at (up to) 128; chunk channels in sublane multiples too.
    t = min(128, T)
    c = int(budget // max(M * t * per_elem, 1))
    if c >= C:
        return C, t
    c = max((c // 8) * 8, 8)
    # TODO(synk): also chunk M for extreme M; (8, 128) is the smallest
    # lane/sublane-dense block emitted here.
    return min(c, C), t


def batch_norm_local(x, weight=None, bias=None, *, virtual_bs=8, eps=1e-5,
                     affine=True, donate=False,
                     max_fused_block_bytes=None, t_chunk=None, c_chunk=None):
    """Forward pass of BatchNormLocal.  x: (B, C, T)."""
    B, C, T = x.shape
    G = -(-B // virtual_bs)            # ceil(B / virtual_bs)
    if B % G != 0:
        # torch's x.view(G, -1, C, T) has the same constraint.
        raise ValueError(f"batch {B} does not split evenly into {G} virtual groups")
    M = B // G

    vmem_bytes, bf16_vpu, multi_core = _hw_config()
    # ~112 MiB scoped limit on 128-MiB chips (v5e/v6e), ~52 MiB on v7x.
    vmem_limit = int(max(min(vmem_bytes - (12 << 20), 112 << 20), 32 << 20))
    fused_threshold = (max_fused_block_bytes if max_fused_block_bytes is not None
                       else max(vmem_limit - (8 << 20), 16 << 20))
    chunk_budget = max(int(vmem_limit * 0.45), 8 << 20)
    f32_fma = not bf16_vpu             # v5e: keep the FMA in f32, cast at store

    if affine:
        w = weight.astype(jnp.float32).reshape(C, 1)
        b = bias.astype(jnp.float32).reshape(C, 1)
    else:
        w = jnp.ones((C, 1), jnp.float32)
        b = jnp.zeros((C, 1), jnp.float32)

    xg = x.reshape(G, M, C, T)
    isz = x.dtype.itemsize

    # In-kernel sub-tile width for the fused path (lane-aligned, <=512).
    if T >= 256:
        t_sub = min(512, (T // 128) * 128)
        n_sub, t_rem = T // t_sub, T % t_sub
    else:
        t_sub, n_sub, t_rem = T, 0, T

    block_bytes = M * C * T * isz
    # Double-buffered in + out blocks plus bounded per-sub-tile f32 temps.
    fused_bytes = 4 * block_bytes + 24 * C * max(t_sub, t_rem)

    use_fused = fused_bytes <= fused_threshold
    balance_split = False
    if multi_core and G == 1 and T >= 256 and use_fused:
        # v7x: a grid of (1,) leaves one of the 2 TensorCores idle; take the
        # chunked path with >=2 T-chunks so the all-parallel grid balances.
        use_fused = False
        balance_split = True
    # TODO(synk): if production T is routinely < 128 (sub-lane-width stores),
    # accept a channels-last (B, T, C) layout and tile (M, T, C) instead.

    io_alias = {0: 0} if donate else {}

    if use_fused:
        # ---------------- fused single-kernel path ----------------
        kernel = functools.partial(
            _bn_fused_kernel, eps=eps, affine=affine, inv_n=1.0 / (M * T),
            t_sub=t_sub, n_sub=n_sub, t_rem=t_rem, f32_fma=f32_fma)
        out = pl.pallas_call(
            kernel,
            out_shape=jax.ShapeDtypeStruct((G, M, C, T), x.dtype),
            grid_spec=pltpu.PrefetchScalarGridSpec(
                num_scalar_prefetch=0,
                grid=(G,),
                in_specs=[
                    pl.BlockSpec((1, M, C, T), lambda g: (g, 0, 0, 0)),
                    pl.BlockSpec((C, 1), lambda g: (0, 0)),
                    pl.BlockSpec((C, 1), lambda g: (0, 0)),
                ],
                out_specs=pl.BlockSpec((1, M, C, T), lambda g: (g, 0, 0, 0)),
            ),
            compiler_params=pltpu.CompilerParams(
                dimension_semantics=("parallel",),
                vmem_limit_bytes=vmem_limit),
            input_output_aliases=io_alias,
        )(xg, w, b)
        return out.reshape(B, C, T)

    # ---------------- chunked two-pass path (VMEM-safe) ----------------
    auto_c, auto_t = _pick_chunks(M, C, T, isz, chunk_budget)
    if balance_split:
        auto_t = min(auto_t, max(128, ((T // 2) // 128) * 128))
    tT = t_chunk if t_chunk is not None else auto_t
    tC = c_chunk if c_chunk is not None else auto_c
    n_tc = pl.cdiv(T, tT)
    n_cc = pl.cdiv(C, tC)

    stats_kernel = functools.partial(_bn_stats_kernel, t_total=T, t_chunk=tT)
    s1, s2 = pl.pallas_call(
        stats_kernel,
        out_shape=(jax.ShapeDtypeStruct((G, C, 1), jnp.float32),
                   jax.ShapeDtypeStruct((G, C, 1), jnp.float32)),
        grid_spec=pltpu.PrefetchScalarGridSpec(
            num_scalar_prefetch=0,
            grid=(G, n_cc, n_tc),
            in_specs=[pl.BlockSpec((1, M, tC, tT), lambda g, c, t: (g, 0, c, t))],
            out_specs=[pl.BlockSpec((1, tC, 1), lambda g, c, t: (g, c, 0)),
                       pl.BlockSpec((1, tC, 1), lambda g, c, t: (g, c, 0))],
        ),
        compiler_params=pltpu.CompilerParams(
            dimension_semantics=("parallel", "parallel", "arbitrary"),
            vmem_limit_bytes=vmem_limit),
    )(xg)

    # Tiny per-(group, channel) finishing math in plain JAX (G*C values).
    inv_n = 1.0 / (M * T)
    mean = s1 * inv_n                                   # (G, C, 1)
    var = jnp.maximum(s2 * inv_n - mean * mean, 0.0)
    rstd = jax.lax.rsqrt(var + eps)
    if affine:
        scale = rstd * w[None]                          # (G, C, 1)
        shift = b[None] - mean * scale
    else:
        scale = rstd
        shift = -(mean * scale)

    apply_kernel = functools.partial(_bn_apply_kernel, f32_fma=f32_fma)
    out = pl.pallas_call(
        apply_kernel,
        out_shape=jax.ShapeDtypeStruct((G, M, C, T), x.dtype),
        grid_spec=pltpu.PrefetchScalarGridSpec(
            num_scalar_prefetch=0,
            grid=(G, n_cc, n_tc),
            in_specs=[
                pl.BlockSpec((1, M, tC, tT), lambda g, c, t: (g, 0, c, t)),
                pl.BlockSpec((1, tC, 1), lambda g, c, t: (g, c, 0)),
                pl.BlockSpec((1, tC, 1), lambda g, c, t: (g, c, 0)),
            ],
            out_specs=pl.BlockSpec((1, M, tC, tT), lambda g, c, t: (g, 0, c, t)),
        ),
        compiler_params=pltpu.CompilerParams(
            dimension_semantics=("parallel", "parallel", "parallel"),
            vmem_limit_bytes=vmem_limit),
        input_output_aliases=io_alias,
    )(xg, scale, shift)
    return out.reshape(B, C, T)


def _reference(x, weight, bias, *, virtual_bs=8, eps=1e-5, affine=True):
    """Pure-JAX reference mirroring the PyTorch forward."""
    B, C, T = x.shape
    G = -(-B // virtual_bs)
    xg = x.reshape(G, -1, C, T).astype(jnp.float32)
    mean = jnp.mean(xg, axis=(1, 3), keepdims=True)
    var = jnp.var(xg, axis=(1, 3), keepdims=True)       # unbiased=False
    xn = (xg - mean) / jnp.sqrt(var + eps)
    if affine:
        xn = xn * weight[None, None, :, None] + bias[None, None, :, None]
    return xn.reshape(B, C, T).astype(x.dtype)


if __name__ == "__main__":
    key = jax.random.PRNGKey(0)
    k1, k2, k3, k4, k5 = jax.random.split(key, 5)

    # --- Test 1: fused single-kernel path (module semantics, small shapes,
    #             DC offset exercises the pivot; donate exercises aliasing). ---
    B, C, T = 4, 8, 16
    vbs = 2
    x = jax.random.normal(k1, (B, C, T), dtype=jnp.float32) + 3.0
    weight = jnp.ones((C,), dtype=jnp.float32)   # init exactly as in __init__
    bias = jnp.zeros((C,), dtype=jnp.float32)
    ref = _reference(x, weight, bias, virtual_bs=vbs, eps=1e-5, affine=True)
    out = jax.block_until_ready(
        batch_norm_local(x, weight, bias, virtual_bs=vbs, eps=1e-5, affine=True,
                         donate=True))
    assert out.shape == x.shape and out.dtype == x.dtype
    assert jnp.allclose(out, ref, atol=1e-4, rtol=1e-4), "fused path mismatch"

    # --- Test 2: forced chunked two-pass path with a ragged T tail. ---
    B2, C2, T2 = 4, 8, 320
    x2 = jax.random.normal(k2, (B2, C2, T2), dtype=jnp.float32)
    w2 = 1.0 + 0.1 * jax.random.normal(k3, (C2,), dtype=jnp.float32)
    b2 = 0.1 * jax.random.normal(k4, (C2,), dtype=jnp.float32)
    ref2 = _reference(x2, w2, b2, virtual_bs=2, eps=1e-5, affine=True)
    out2 = jax.block_until_ready(
        batch_norm_local(x2, w2, b2, virtual_bs=2, eps=1e-5, affine=True,
                         max_fused_block_bytes=0, t_chunk=128))
    assert out2.shape == x2.shape and out2.dtype == x2.dtype
    assert jnp.allclose(out2, ref2, atol=1e-4, rtol=1e-4), "chunked path mismatch"

    # --- Test 3: forced chunked path with channel chunking (C split). ---
    B3, C3, T3 = 2, 16, 256
    x3 = jax.random.normal(k5, (B3, C3, T3), dtype=jnp.float32)
    w3 = jnp.ones((C3,), dtype=jnp.float32)
    b3 = jnp.zeros((C3,), dtype=jnp.float32)
    ref3 = _reference(x3, w3, b3, virtual_bs=2, eps=1e-5, affine=True)
    out3 = jax.block_until_ready(
        batch_norm_local(x3, w3, b3, virtual_bs=2, eps=1e-5, affine=True,
                         max_fused_block_bytes=0, t_chunk=128, c_chunk=8))
    assert out3.shape == x3.shape and out3.dtype == x3.dtype
    assert jnp.allclose(out3, ref3, atol=1e-4, rtol=1e-4), "C-chunked path mismatch"

    print("KERNEL_OK")
</pallas_src>

<mosaic_0001>
module attributes {stable_mosaic.version = 11 : i64} {
  func.func @_bn_fused_kernel(%arg0: i32, %arg1: memref<1x2x8x16xf32, #tpu.memory_space<vmem>>, %arg2: memref<8x1xf32, #tpu.memory_space<vmem>>, %arg3: memref<8x1xf32, #tpu.memory_space<vmem>>, %arg4: memref<1x2x8x16xf32, #tpu.memory_space<vmem>>) attributes {dimension_semantics = [#tpu.dimension_semantics<parallel>], iteration_bounds = array<i64: 2>, scalar_prefetch = 0 : i64, scratch_operands = 0 : i64, tpu.core_type = #tpu.core_type<tc>, window_params = [{transform_indices = @transform_0, window_bounds = array<i64: 1, 2, 8, 16>}, {pipeline_mode = #tpu.pipeline_mode<synchronous>, transform_indices = @transform_1, window_bounds = array<i64: 8, 1>}, {pipeline_mode = #tpu.pipeline_mode<synchronous>, transform_indices = @transform_2, window_bounds = array<i64: 8, 1>}, {transform_indices = @transform_3, window_bounds = array<i64: 1, 2, 8, 16>}]} {
    %c0 = arith.constant 0 : index
    %c0_0 = arith.constant 0 : index
    %c0_1 = arith.constant 0 : index
    %c0_2 = arith.constant 0 : index
    %0 = vector.load %arg1[%c0, %c0_0, %c0_1, %c0_2] : memref<1x2x8x16xf32, #tpu.memory_space<vmem>>, vector<1x1x8x1xf32>
    %1 = vector.shape_cast %0 : vector<1x1x8x1xf32> to vector<8x1xf32>
    %cst = arith.constant 0.000000e+00 : f32
    %2 = vector.broadcast %cst : f32 to vector<8x1xf32>
    %c0_i32 = arith.constant 0 : i32
    %c0_3 = arith.constant 0 : index
    %3 = arith.index_cast %c0_i32 : i32 to index
    %c0_4 = arith.constant 0 : index
    %c0_5 = arith.constant 0 : index
    %4 = vector.load %arg1[%c0_3, %3, %c0_4, %c0_5] : memref<1x2x8x16xf32, #tpu.memory_space<vmem>>, vector<1x1x8x16xf32>
    %5 = vector.shape_cast %4 : vector<1x1x8x16xf32> to vector<8x16xf32>
    %6 = vector.broadcast %1 : vector<8x1xf32> to vector<8x16xf32>
    %7 = arith.subf %5, %6 : vector<8x16xf32>
    %cst_6 = arith.constant dense<0.000000e+00> : vector<8xf32>
    %8 = vector.multi_reduction <add>, %7, %cst_6 [1] : vector<8x16xf32> to vector<8xf32>
    %9 = vector.shape_cast %8 : vector<8xf32> to vector<8x1xf32>
    %10 = arith.addf %2, %9 : vector<8x1xf32>
    %11 = arith.mulf %7, %7 : vector<8x16xf32>
    %cst_7 = arith.constant dense<0.000000e+00> : vector<8xf32>
    %12 = vector.multi_reduction <add>, %11, %cst_7 [1] : vector<8x16xf32> to vector<8xf32>
    %13 = vector.shape_cast %12 : vector<8xf32> to vector<8x1xf32>
    %14 = arith.addf %2, %13 : vector<8x1xf32>
    %c1_i32 = arith.constant 1 : i32
    %c0_8 = arith.constant 0 : index
    %15 = arith.index_cast %c1_i32 : i32 to index
    %c0_9 = arith.constant 0 : index
    %c0_10 = arith.constant 0 : index
    %16 = vector.load %arg1[%c0_8, %15, %c0_9, %c0_10] : memref<1x2x8x16xf32, #tpu.memory_space<vmem>>, vector<1x1x8x16xf32>
    %17 = vector.shape_cast %16 : vector<1x1x8x16xf32> to vector<8x16xf32>
    %18 = vector.broadcast %1 : vector<8x1xf32> to vector<8x16xf32>
    %19 = arith.subf %17, %18 : vector<8x16xf32>
    %cst_11 = arith.constant dense<0.000000e+00> : vector<8xf32>
    %20 = vector.multi_reduction <add>, %19, %cst_11 [1] : vector<8x16xf32> to vector<8xf32>
    %21 = vector.shape_cast %20 : vector<8xf32> to vector<8x1xf32>
    %22 = arith.addf %10, %21 : vector<8x1xf32>
    %23 = arith.mulf %19, %19 : vector<8x16xf32>
    %cst_12 = arith.constant dense<0.000000e+00> : vector<8xf32>
    %24 = vector.multi_reduction <add>, %23, %cst_12 [1] : vector<8x16xf32> to vector<8xf32>
    %25 = vector.shape_cast %24 : vector<8xf32> to vector<8x1xf32>
    %26 = arith.addf %14, %25 : vector<8x1xf32>
    %c2_i32 = arith.constant 2 : i32
    %cst_13 = arith.constant 3.125000e-02 : f32
    %27 = vector.broadcast %cst_13 : f32 to vector<8x1xf32>
    %28 = arith.mulf %22, %27 : vector<8x1xf32>
    %29 = arith.addf %1, %28 : vector<8x1xf32>
    %cst_14 = arith.constant 3.125000e-02 : f32
    %30 = vector.broadcast %cst_14 : f32 to vector<8x1xf32>
    %31 = arith.mulf %26, %30 : vector<8x1xf32>
    %32 = arith.mulf %28, %28 : vector<8x1xf32>
    %33 = arith.subf %31, %32 : vector<8x1xf32>
    %cst_15 = arith.constant 0.000000e+00 : f32
    %34 = vector.broadcast %cst_15 : f32 to vector<8x1xf32>
    %35 = arith.maximumf %33, %34 : vector<8x1xf32>
    %cst_16 = arith.constant 9.99999974E-6 : f32
    %36 = vector.broadcast %cst_16 : f32 to vector<8x1xf32>
    %37 = arith.addf %35, %36 : vector<8x1xf32>
    %38 = math.rsqrt %37 : vector<8x1xf32>
    %c0_17 = arith.constant 0 : index
    %c0_18 = arith.constant 0 : index
    %39 = vector.load %arg2[%c0_17, %c0_18] : memref<8x1xf32, #tpu.memory_space<vmem>>, vector<8x1xf32>
    %40 = arith.mulf %38, %39 : vector<8x1xf32>
    %c0_19 = arith.constant 0 : index
    %c0_20 = arith.constant 0 : index
    %41 = vector.load %arg3[%c0_19, %c0_20] : memref<8x1xf32, #tpu.memory_space<vmem>>, vector<8x1xf32>
    %42 = arith.mulf %29, %40 : vector<8x1xf32>
    %43 = arith.subf %41, %42 : vector<8x1xf32>
    %c0_i32_21 = arith.constant 0 : i32
    %c0_22 = arith.constant 0 : index
    %44 = arith.index_cast %c0_i32_21 : i32 to index
    %c0_23 = arith.constant 0 : index
    %c0_24 = arith.constant 0 : index
    %45 = vector.load %arg1[%c0_22, %44, %c0_23, %c0_24] : memref<1x2x8x16xf32, #tpu.memory_space<vmem>>, vector<1x1x8x16xf32>
    %46 = vector.shape_cast %45 : vector<1x1x8x16xf32> to vector<8x16xf32>
    %47 = vector.broadcast %40 : vector<8x1xf32> to vector<8x16xf32>
    %48 = arith.mulf %46, %47 : vector<8x16xf32>
    %49 = vector.broadcast %43 : vector<8x1xf32> to vector<8x16xf32>
    %50 = arith.addf %48, %49 : vector<8x16xf32>
    %c0_25 = arith.constant 0 : index
    %51 = arith.index_cast %c0_i32_21 : i32 to index
    %c0_26 = arith.constant 0 : index
    %c0_27 = arith.constant 0 : index
    %52 = vector.load %arg4[%c0_25, %51, %c0_26, %c0_27] : memref<1x2x8x16xf32, #tpu.memory_space<vmem>>, vector<1x1x8x16xf32>
    %53 = vector.shape_cast %52 : vector<1x1x8x16xf32> to vector<8x16xf32>
    %54 = vector.shape_cast %50 : vector<8x16xf32> to vector<1x1x8x16xf32>
    tpu.vector_store %arg4[%c0_25, %51, %c0_26, %c0_27], %54 {strides = array<i32>} : memref<1x2x8x16xf32, #tpu.memory_space<vmem>>, vector<1x1x8x16xf32>,
    %c1_i32_28 = arith.constant 1 : i32
    %c0_29 = arith.constant 0 : index
    %55 = arith.index_cast %c1_i32_28 : i32 to index
    %c0_30 = arith.constant 0 : index
    %c0_31 = arith.constant 0 : index
    %56 = vector.load %arg1[%c0_29, %55, %c0_30, %c0_31] : memref<1x2x8x16xf32, #tpu.memory_space<vmem>>, vector<1x1x8x16xf32>
    %57 = vector.shape_cast %56 : vector<1x1x8x16xf32> to vector<8x16xf32>
    %58 = vector.broadcast %40 : vector<8x1xf32> to vector<8x16xf32>
    %59 = arith.mulf %57, %58 : vector<8x16xf32>
    %60 = vector.broadcast %43 : vector<8x1xf32> to vector<8x16xf32>
    %61 = arith.addf %59, %60 : vector<8x16xf32>
    %c0_32 = arith.constant 0 : index
    %62 = arith.index_cast %c1_i32_28 : i32 to index
    %c0_33 = arith.constant 0 : index
    %c0_34 = arith.constant 0 : index
    %63 = vector.load %arg4[%c0_32, %62, %c0_33, %c0_34] : memref<1x2x8x16xf32, #tpu.memory_space<vmem>>, vector<1x1x8x16xf32>
    %64 = vector.shape_cast %63 : vector<1x1x8x16xf32> to vector<8x16xf32>
    %65 = vector.shape_cast %61 : vector<8x16xf32> to vector<1x1x8x16xf32>
    tpu.vector_store %arg4[%c0_32, %62, %c0_33, %c0_34], %65 {strides = array<i32>} : memref<1x2x8x16xf32, #tpu.memory_space<vmem>>, vector<1x1x8x16xf32>,
    %c2_i32_35 = arith.constant 2 : i32
    return
  }
  func.func @transform_0(%arg0: i32) -> (i32, i32, i32, i32) {
    %c0_i32 = arith.constant 0 : i32
    %c0_i32_0 = arith.constant 0 : i32
    %c0_i32_1 = arith.constant 0 : i32
    %c0_i32_2 = arith.constant 0 : i32
    return %arg0, %c0_i32, %c0_i32_0, %c0_i32_1 : i32, i32, i32, i32
  }
  func.func @transform_1(%arg0: i32) -> (i32, i32) {
    %c0_i32 = arith.constant 0 : i32
    %c0_i32_0 = arith.constant 0 : i32
    %c0_i32_1 = arith.constant 0 : i32
    return %c0_i32, %c0_i32_0 : i32, i32
  }
  func.func @transform_2(%arg0: i32) -> (i32, i32) {
    %c0_i32 = arith.constant 0 : i32
    %c0_i32_0 = arith.constant 0 : i32
    %c0_i32_1 = arith.constant 0 : i32
    return %c0_i32, %c0_i32_0 : i32, i32
  }
  func.func @transform_3(%arg0: i32) -> (i32, i32, i32, i32) {
    %c0_i32 = arith.constant 0 : i32
    %c0_i32_0 = arith.constant 0 : i32
    %c0_i32_1 = arith.constant 0 : i32
    %c0_i32_2 = arith.constant 0 : i32
    return %arg0, %c0_i32, %c0_i32_0, %c0_i32_1 : i32, i32, i32, i32
  }
}

</mosaic_0001>

<bundles_post_ra>
// kernel: tpu_custom_call.1
= control target key start
LH: loop header
LB: loop body
LE: loop exit
PB: predicated region body
PF: predicated region fallthrough
CT: control target
= control target key end

     0   :  { %8 = vsyncpa [#allocation3], 0  ;;  %s713_s0 = inlined_call_operand.hbm [shape: f32[2,2,8,16], index: 0, kind: input, shape index: {}, may-alias: {0,3}]   ;;  %s714_s1 = inlined_call_operand.vmem [shape: f32[8,1], index: 1, kind: input, shape index: {}]   ;;  %s715_s2 = inlined_call_operand.vmem [shape: f32[8,1], index: 2, kind: input, shape index: {}]   ;;  %s716_s3 = inlined_call_operand.hbm [shape: f32[2,2,8,16], index: 3, kind: output, shape index: {}, may-alias: {0,3}]  }
   0x1   :  { %10 = vsyncpa [#allocation3 + $0x1], 0 }
   0x2   :  { %11 = vsyncpa [#allocation4], 0 }
   0x3   :  { %13 = vsyncpa [#allocation4 + $0x1], 0  ;;  %s535_s12 = smov 0   ;;  %s537_s13 = smov 0  }
   0x4   :  { %s539_s14 = smov 0   ;;  %s541_s15 = smov 0  }
   0x5 LB: > { %s556_s16 = sadd.s32 4294967295, %s506_s15   ;;  %s336_s17 = sadd.s32 4294967294, %s506_s15   ;;  %s506_s15 = sphi %s541_s15, %s729_s15   ;;  %s502_s14 = sphi %s539_s14, %s728_s14   ;;  %s498_s13 = sphi %s537_s13, %s727_s13   ;;  %s494_s12 = sphi %s535_s12, %s726_s12  }
   0x6   : > { %s560_s18 = sadd.s32 1, %s506_s15   ;;  %s26_s19 = sadd.s32 1, %s502_s14 }
   0x7   : > { %s23_s20 = ssub.s32 %s506_s15, %s560_s18  ;;  %p33_p0 = scmp.ne.s32.totalorder %s502_s14, %s498_s13 }
   0x8   : > { %p24_p1 = scmp.eq.s32.totalorder %s23_s20, 0  ;;  %p34_p2 = scmp.eq.s32.totalorder %s506_s15, 0 }
   0x9   : > { %p39_p3 = scmp.ne.s32.totalorder %s498_s13, %s494_s12  ;;  %p40_p4 = scmp.eq.s32.totalorder %s556_s16, 0 }
   0xa   : > { %s572_s21 = scalar_select %p24_p1, %s502_s14, %s26_s19  }
   0xb   : > { %p574_p5 = por %p34_p2, %p33_p0  ;;  %p578_p6 = por %p40_p4, %p39_p3 }
   0xc   : > { %p105_p7 = scmp.eq.s32.totalorder %s556_s16, 1  ;;  %p111_p8 = scmp.eq.s32.totalorder %s336_s17, 1 }
   0xd   : > { %p367_p10 = scmp.lt.s32.totalorder %s506_s15, 2  ;;  %s137_s26 = sand.u32 1, %s502_s14  }
   0xe   : > { %p585_p11 = por %p105_p7, %p33_p0  ;;  %p589_p12 = por %p111_p8, %p39_p3 }
   0xf   : > { %s353_s27 = sshll.u32 %s506_s15, 8  ;;  %s339_s28 = sshll.u32 %s137_s26, 4 }
  0x10   : > { %s720_s24 = scalar_select %p585_p11, 1, 0 }
  0x11   : > { %s721_s25 = scalar_select %p589_p12, 1, 0 }
  0x12   : > { %s598_s4 = scalar_lea.hbm %s713_s0, %s353_s27  ;;  %s141_s5 = scalar_lea.vmem [#allocation2], %s339_s28 }
  0x13   : > { %s148_s6 = sshll.u32 %s141_s5, 4  ;;  %p602_p13 = pnand %p367_p10, %p574_p5  ;;  %s606_s6 = int_to_ptr.vmem [resolvable:$true] %s148_s6 }
  0x14   : > { %s608_s8 = scalar_lea.sflag [#allocation3], %s137_s26  ;;  %s410_s9 = scalar_lea.hbm %s598_s4, 256 }
  0x15   : > { %p411_p0 = scmp.ne.s32.totalorder %s598_s4, %s410_s9  ;;  %p412_p1 = pneg %p602_p13 }
  0x16   : > { %s415_s17 = scalar_lea.hbm %s713_s0, 512  ;;  %p416_p4 = scmp.lt.u32.totalorder %s598_s4, %s713_s0 }
  0x17   : > { %p413_p2 = pnand %p412_p1, %p411_p0  ;;  %p417_p5 = scmp.lt.u32.totalorder %s415_s17, %s410_s9 }
  0x18   : > { %p419_p8 = scmp.lt.u32.totalorder %s410_s9, %s598_s4 }
  0x19   : > { %p414_p3 = pneg %p413_p2  ;;  %p418_p7 = por %p417_p5, %p416_p4 }
  0x1b   : > { %p420_p10 = por %p419_p8, %p418_p7 }
  0x1d   : > { %p421_p9 = pnand %p420_p10, %p414_p3 }
  0x1f   : > { %424 = shalt.err (!%p421_p9)
}
  0x20   : > { %s425_s22 = scalar_lea.vmem %s606_s6, 256  ;;  %s508_s26 = smov [#allocation2]  }
  0x21   : > { %p426_p0 = scmp.ne.s32.totalorder %s606_s6, %s425_s22  ;;  %s430_s27 = sshll.u32 %s508_s26, 4  ;;  %s431_s27 = int_to_ptr.vmem [resolvable:$false] %s430_s27 }
  0x22   : > { %s432_s28 = scalar_lea.vmem %s431_s27, 512  ;;  %p433_p11 = scmp.lt.s32.totalorder %s606_s6, %s431_s27 }
  0x23   : > { %p428_p2 = pnand %p426_p0, %p412_p1  ;;  %p434_p4 = scmp.lt.s32.totalorder %s432_s28, %s425_s22 }
  0x25   : > { %p429_p12 = pneg %p428_p2  ;;  %p435_p5 = por %p434_p4, %p433_p11 }
  0x27   : > { %p436_p7 = pnand %p435_p5, %p429_p12 }
  0x29   : > { %439 = shalt.err (!%p436_p7)
}
  0x2a   : > { %s509_s29 = smov 128   ;;  %s510_s30 = smov 8  }
  0x2b   : > { %362 = dma.hbm_to_vmem [thread:$0]  (!%p602_p13), %s598_s4, 256, %s606_s6, %s608_s8, %s509_s29, %s509_s29, %s510_s30  }
  0x2c   : > { %p342_p9 = scmp.ge.s32.totalorder %s506_s15, 1  ;;  %p156_p1 = scmp.lt.s32.totalorder %s506_s15, 3 }
  0x2e   : > { %p157_p3 = pnand %p342_p9, %p156_p1 }
  0x2f   : > { %s639_s5 = sand.u32 (!%p157_p3), 1, %s498_s13  }
  0x30   : > { %160 = sbr.rel (%p157_p3) target bundleno = 511 (0x1ff), region = 32  ;;  %s343_s9 = sshll.u32 (!%p157_p3), %s639_s5, 4 }
  0x31   : > { %s163_s10 = scalar_lea.sflag (!%p157_p3), [#allocation3], %s639_s5  ;;  %s166_s11 = scalar_lea.vmem (!%p157_p3), [#allocation2], %s343_s9 }
  0x37   : > { %485 = dma.done.wait (%p578_p6), %s163_s10, 256  }
  0x38   : > { %487 = vsyncadd (%p578_p6), %s163_s10, 4294967040  ;;  %v511_v0 = vmov 0   ;;  %v189_v1 = vld [vmem:[%s166_s11] sm:$0xff]  ;;  %v345_v2 = vld [vmem:[%s166_s11 + $0x8] sm:$0xff]  ;;  %vm196_vm0 = vcmask 130048   ;;  %s188_s8 = scalar_lea.vmem [#allocation5], %s343_s9 }
  0x39   : > { %406 = vset.pattern.permute.xlu0 %v511_v0  ;;  %407 = vset.pattern.permute.xlu1 %v511_v0  ;;  %v226_v24 = vld [vmem:[%s714_s1] sm:$0xff]  ;;  %s263_s17 = sshll.u32 %s188_s8, 4  ;;  %s354_s19 = sshll.u32 %s556_s16, 8  ;;  %s662_s17 = int_to_ptr.vmem [resolvable:$true] %s263_s17 }
  0x3a   : > { %192 = vperm.xlu0 %406, %v189_v1   ;;  %v228_v28 = vld [vmem:[%s715_s2] sm:$0xff]  ;;  %s667_s26 = scalar_lea.hbm %s716_s3, %s354_s19  ;;  %s250_s16 = scalar_lea.sflag [#allocation4], %s639_s5 }
  0x3b   : > { %s440_s27 = scalar_lea.vmem %s662_s17, 256  ;;  %p723_p11 = scmp.ne.s32.totalorder %s720_s24, 0 }
  0x3c   : > { %p441_p6 = scmp.ne.s32.totalorder %s662_s17, %s440_s27  ;;  %s512_s28 = smov [#allocation5]  }
  0x3d   : > { %s444_s29 = sshll.u32 %s512_s28, 4  ;;  %s445_s29 = int_to_ptr.vmem [resolvable:$false] %s444_s29 }
  0x3e   : > { %p442_p12 = pnand %p441_p6, %p723_p11  ;;  %s446_s30 = scalar_lea.vmem %s445_s29, 512 }
  0x3f   : > { %p447_p8 = scmp.lt.s32.totalorder %s662_s17, %s445_s29  ;;  %p448_p10 = scmp.lt.s32.totalorder %s446_s30, %s440_s27 }
  0x40   : > { %p443_p13 = pneg %p442_p12 }
  0x41   : > { %p449_p0 = por %p448_p10, %p447_p8 }
  0x43   : > { %p450_p2 = pnand %p449_p0, %p443_p13 }
  0xb9   : > { %v193_v3 = vpop.permute.xlu0 %192 }
  0xba   : > { %v195_v4 = vsub.f32 %v189_v1, %v193_v3  ;;  %v208_v5 = vsub.f32 %v345_v2, %v193_v3 }
  0xbc   : > { %v209_v6 = vsel %vm196_vm0, %v208_v5, 0.0  ;;  %v197_v7 = vsel %vm196_vm0, %v195_v4, 0.0  ;;  %v201_v8 = vmul.f32 %v195_v4, %v195_v4  ;;  %v213_v10 = vmul.f32 %v208_v5, %v208_v5 }
  0xbd   : > { %210 = vadd.xlane.f32.xlu1 %v209_v6  ;;  %198 = vadd.xlane.f32.xlu0 %v197_v7 }
  0xbe   : > { %v202_v9 = vsel %vm196_vm0, %v201_v8, 0.0  ;;  %v214_v11 = vsel %vm196_vm0, %v213_v10, 0.0 }
  0xc1   : > { %203 = vadd.xlane.f32.xlu1 %v202_v9 }
  0xc5   : > { %215 = vadd.xlane.f32.xlu1 %v214_v11 }
 0x14a   : > { %v211_v12 = vpop.xlane.xlu1 %210  ;;  %v199_v13 = vpop.xlane.xlu0 %198 }
 0x14b   : > { %v212_v14 = vadd.f32 %v211_v12, %v199_v13 }
 0x14d   : > { %v218_v16 = vmul.f32 0.03125, %v212_v14 }
 0x14e   : > { %v204_v15 = vpop.xlane.xlu1 %203 }
 0x14f   : > { %v221_v19 = vmul.f32 %v218_v16, %v218_v16  ;;  %v219_v26 = vadd.f32 %v218_v16, %v189_v1 }
 0x152   : > { %v216_v17 = vpop.xlane.xlu1 %215 }
 0x153   : > { %v217_v18 = vadd.f32 %v216_v17, %v204_v15 }
 0x155   : > { %v220_v20 = vmul.f32 0.03125, %v217_v18 }
 0x157   : > { %v222_v21 = vsub.f32 %v220_v20, %v221_v19 }
 0x159   : > { %v223_v22 = vmax.f32 %v222_v21, 0.0 }
 0x15b   : > { %v224_v23 = vadd.f32 1e-05, %v223_v22 }
 0x15d   : > { %408 = vrsqrt.f32 %v224_v23 }
 0x167   : > { %v409_v25 = vpop.eup %408 }
 0x168   : > { %v227_v27 = vmul.f32 %v409_v25, %v226_v24 }
 0x16a   : > { %233 = vperm.xlu1 %407, %v227_v27   ;;  %v229_v29 = vmul.f32 %v227_v27, %v219_v26 }
 0x16c   : > { %v230_v30 = vsub.f32 %v228_v28, %v229_v29 }
 0x16e   : > { %239 = vperm.xlu1 %407, %v230_v30  }
 0x1e9   : > { %v234_v31 = vpop.permute.xlu1 %233 }
 0x1ea   : > { %v236_v32 = vmul.f32 %v234_v31, %v189_v1  ;;  %v245_v33 = vmul.f32 %v345_v2, %v234_v31 }
 0x1ed   : > { %v240_v34 = vpop.permute.xlu1 %239 }
 0x1ee   : > { %v242_v35 = vadd.f32 %v240_v34, %v236_v32  ;;  %v246_v36 = vadd.f32 %v245_v33, %v240_v34 }
 0x1f0   : > { %243 = vst.msk [vmem:[%s188_s8] sm:$0xff] %vm196_vm0, %v242_v35  ;;  %347 = vst.msk [vmem:[%s188_s8 + $0x8] sm:$0xff] %vm196_vm0, %v246_v36 }
 0x1f1   : > { %453 = shalt.err (!%p450_p2)
}
 0x1f2   : > { %s454_s9 = scalar_lea.hbm %s667_s26, 256  ;;  %s458_s23 = scalar_lea.hbm %s716_s3, 512 }
 0x1f3   : > { %p455_p4 = scmp.ne.s32.totalorder %s667_s26, %s454_s9  ;;  %p459_p9 = scmp.lt.u32.totalorder %s667_s26, %s716_s3 }
 0x1f4   : > { %p460_p1 = scmp.lt.u32.totalorder %s458_s23, %s454_s9  ;;  %p462_p6 = scmp.lt.u32.totalorder %s454_s9, %s667_s26 }
 0x1f5   : > { %p456_p5 = pnand %p455_p4, %p723_p11 }
 0x1f6   : > { %p461_p3 = por %p460_p1, %p459_p9 }
 0x1f7   : > { %p457_p7 = pneg %p456_p5 }
 0x1f8   : > { %p463_p12 = por %p462_p6, %p461_p3 }
 0x1fa   : > { %p464_p13 = pnand %p463_p12, %p457_p7 }
 0x1fc   : > { %467 = shalt.err (!%p464_p13)
}
 0x1fd   : > { %s513_s7 = smov 128   ;;  %s514_s8 = smov 8  }
 0x1fe   : > { %357 = dma.vmem_to_hbm [thread:$0]  (%p723_p11), %s662_s17, 256, %s667_s26, %s250_s16, %s513_s7, %s513_s7, %s514_s8  }
 0x1ff PF: > { %s278_s19 = sand.u32 1, %s494_s12   ;;  %p724_p8 = scmp.ne.s32.totalorder %s721_s25, 0 }
 0x200   : > { %p725_p10 = scmp.ge.s32.totalorder %s506_s15, 2  ;;  %s279_s20 = scalar_lea.sflag [#allocation4], %s278_s19 }
 0x202   : > { %p364_p0 = pnand %p725_p10, %p724_p8 }
 0x204   : > { %489 = dma.done.wait (!%p364_p0), %s279_s20, 256  }
 0x205   : > { %491 = vsyncadd (!%p364_p0), %s279_s20, 4294967040  ;;  %p16_p2 = scmp.ge.s32.totalorder %s560_s18, 4   ;;  %s726_s12 = smov %s498_s13 }
 0x206   : > { %s727_s13 = smov %s502_s14  ;;  %s728_s14 = smov %s572_s21 }
 0x207   : > { %s729_s15 = smov %s560_s18  ;;  %18 = sbr.rel (!%p16_p2) target bundleno = 5 (0x5), region = 79 }
 0x20e   :  { %284 = vsyncpa [#allocation3], 1 }
 0x20f   :  { %286 = vsyncpa [#allocation3 + $0x1], 1 }
 0x210   :  { %287 = vsyncpa [#allocation4], 1 }
 0x211   :  { %289 = vsyncpa [#allocation4 + $0x1], 1 }

</bundles_post_ra>
